<compile_context>
chip_gen: v5e
topology: v5e:2x2
jax: 0.10.0
libtpu: 0.0.40
codegen_flags: <defaults>
</compile_context>

<pallas_src>
import jax
import jax.numpy as jnp
from jax.experimental import pallas as pl
from jax.experimental.pallas import tpu as pltpu

_LANE = 128
_SUBLANE = 8


def _round_up(x, m):
    return ((x + m - 1) // m) * m


def _silu(v):
    # SiLU(v) = v*sigmoid(v) = 0.5*v*(1 + tanh(v/2)); one transcendental on the EUP.
    return 0.5 * v * (1.0 + jnp.tanh(0.5 * v))


def mlp_kernel(x_ref, w1_ref, b1_ref, w2_ref, b2_ref, w3_ref, b3_ref, o_ref):
    n_out = o_ref.shape[1]  # static
    x = x_ref[...]
    # Canonical (M,K)@(K,N) matmuls: weights are pre-transposed to (in, out).
    h1 = _silu(
        jnp.dot(x, w1_ref[...], preferred_element_type=jnp.float32) + b1_ref[...]
    )
    h2 = _silu(
        jnp.dot(h1, w2_ref[...], preferred_element_type=jnp.float32) + b2_ref[...]
    )
    h3 = jnp.dot(h2, w3_ref[...], preferred_element_type=jnp.float32) + b3_ref[...]
    # Lane-padded MXU output -> narrow (masked) store of the real n columns only.
    o_ref[...] = _silu(h3[:, :n_out]).astype(o_ref.dtype)


def prepare_params(w1, b1, w2, b2, w3, b3):
    """One-time parameter prep (hoisted out of the per-call path).

    Weights are transposed to (in, out) so the kernel runs canonical (M,K)@(K,N)
    matmuls; biases become (1, out); only W3/b3's output dim is zero-padded to a
    multiple of 128 so the last MXU matmul has a lane-dense N (the padding never
    reaches HBM — the kernel stores only the first n columns)."""
    n, hid = w3.shape
    n_pad = _round_up(n, _LANE)
    w3p = jnp.zeros((n_pad, hid), w3.dtype).at[:n].set(w3)
    b3p = jnp.zeros((n_pad,), b3.dtype).at[:n].set(b3)
    # TODO(synk): optional bf16 weight/x path for v6e/v7x MXU, and optional padding
    # of hid up to 128, if profiling ever shows the MXU/VPU side binding.
    return (
        jnp.asarray(w1).T,            # (48, hid)
        b1.reshape(1, -1),            # (1, hid)
        jnp.asarray(w2).T,            # (hid, hid)
        b2.reshape(1, -1),            # (1, hid)
        jnp.asarray(w3p).T,           # (hid, n_pad)
        b3p.reshape(1, -1),           # (1, n_pad)
    )


def ai_forward(x, params, n_out, block_rows=4096):
    """x: (B, 48) float32; params from prepare_params; returns (B, n_out)."""
    w1t, b1, w2t, b2, w3tp, b3p = params
    B, in_dim = x.shape
    hid = w1t.shape[1]
    n_pad = w3tp.shape[1]

    # ---- VMEM budget (conservative: counts default double-buffering of EVERY input,
    #      the double-buffered x/out tiles, and the f32 h1/h2/h3 intermediates). ----
    weight_bytes = 2 * 4 * (
        w1t.size + b1.size + w2t.size + b2.size + w3tp.size + b3p.size
    )
    vmem_budget = 24 * 1024 * 1024  # leaves headroom under v7x's 32 MiB scoped VMEM
    per_row_bytes = 4 * (2 * in_dim + 2 * n_out + 2 * hid + n_pad)
    avail = vmem_budget - weight_bytes
    assert avail >= per_row_bytes * _SUBLANE, (
        "hidden dim too large for whole-weight VMEM residency"
    )
    # TODO(synk): add a K-reduction grid over hid (and pl.Buffered(1) single-buffered
    # weights) if hid ever grows past the whole-weight-resident regime.

    # ---- Row-tile size: large to amortize per-step overhead, >=4 grid steps so both
    #      v7x TensorCores get work, clamped to the VMEM budget. No jnp.pad of x:
    #      the ragged last block is handled by Pallas (OOB rows are row-independent
    #      garbage whose writes are discarded). ----
    bm = min(block_rows, _round_up(pl.cdiv(B, 4), _SUBLANE))
    bm_cap = max(_SUBLANE, (avail // per_row_bytes) // _SUBLANE * _SUBLANE)
    bm = max(_SUBLANE, min(bm, bm_cap))
    grid = (pl.cdiv(B, bm),)

    return pl.pallas_call(
        mlp_kernel,
        out_shape=jax.ShapeDtypeStruct((B, n_out), x.dtype),
        grid=grid,
        in_specs=[
            pl.BlockSpec((bm, in_dim), lambda i: (i, 0)),    # x: streamed per step
            pl.BlockSpec((in_dim, hid), lambda i: (0, 0)),   # W1^T: VMEM-resident
            pl.BlockSpec((1, hid), lambda i: (0, 0)),        # b1
            pl.BlockSpec((hid, hid), lambda i: (0, 0)),      # W2^T: VMEM-resident
            pl.BlockSpec((1, hid), lambda i: (0, 0)),        # b2
            pl.BlockSpec((hid, n_pad), lambda i: (0, 0)),    # W3^T (lane-padded N)
            pl.BlockSpec((1, n_pad), lambda i: (0, 0)),      # b3 (lane-padded)
        ],
        out_specs=pl.BlockSpec((bm, n_out), lambda i: (i, 0)),  # narrow, full last dim
        compiler_params=pltpu.CompilerParams(
            dimension_semantics=("parallel",),
            vmem_limit_bytes=32 * 1024 * 1024,
        ),
    )(x, w1t, b1, w2t, b2, w3tp, b3p)


def make_params(key, n):
    """Deterministic init matching create_model(n) shapes (PyTorch Linear layout)."""
    in_dim = 48
    hid = 48 + 2 * n
    ks = jax.random.split(key, 6)

    def linear(kw, kb, fan_in, fan_out):
        bound = 1.0 / jnp.sqrt(fan_in)
        w = jax.random.uniform(kw, (fan_out, fan_in), jnp.float32, -bound, bound)
        b = jax.random.uniform(kb, (fan_out,), jnp.float32, -bound, bound)
        return w, b

    w1, b1 = linear(ks[0], ks[1], in_dim, hid)
    w2, b2 = linear(ks[2], ks[3], hid, hid)
    w3, b3 = linear(ks[4], ks[5], hid, n)
    return w1, b1, w2, b2, w3, b3


if __name__ == "__main__":
    key = jax.random.PRNGKey(0)
    k_params, k_x1, k_x2 = jax.random.split(key, 3)

    n = 8            # number of "words" -> hidden = 48 + 2*8 = 64, output = 8
    w1, b1, w2, b2, w3, b3 = make_params(k_params, n)
    params = prepare_params(w1, b1, w2, b2, w3, b3)   # one-time prep

    # Reference in plain JAX (PyTorch semantics: SiLU(v) = v * sigmoid(v)).
    def ref(xv):
        def silu(v):
            return v * jax.nn.sigmoid(v)
        h1 = silu(xv @ w1.T + b1)
        h2 = silu(h1 @ w2.T + b2)
        return silu(h2 @ w3.T + b3)

    # Case 1: tiny batch, single grid step.
    x1 = jax.random.normal(k_x1, (8, 48), jnp.float32)
    out1 = jax.block_until_ready(ai_forward(x1, params, n))
    assert out1.shape == (8, n)
    assert jnp.allclose(out1, ref(x1), atol=1e-4, rtol=1e-4)

    # Case 2: ragged batch (exercises the partial last block / no-pad path).
    x2 = jax.random.normal(k_x2, (100, 48), jnp.float32)
    out2 = jax.block_until_ready(ai_forward(x2, params, n))
    assert out2.shape == (100, n)
    assert jnp.allclose(out2, ref(x2), atol=1e-4, rtol=1e-4)

    print("KERNEL_OK")
</pallas_src>

<mosaic_0001>
module attributes {stable_mosaic.version = 11 : i64} {
  func.func @mlp_kernel(%arg0: i32, %arg1: memref<8x48xf32, #tpu.memory_space<vmem>>, %arg2: memref<48x64xf32, #tpu.memory_space<vmem>>, %arg3: memref<1x64xf32, #tpu.memory_space<vmem>>, %arg4: memref<64x64xf32, #tpu.memory_space<vmem>>, %arg5: memref<1x64xf32, #tpu.memory_space<vmem>>, %arg6: memref<64x128xf32, #tpu.memory_space<vmem>>, %arg7: memref<1x128xf32, #tpu.memory_space<vmem>>, %arg8: memref<8x8xf32, #tpu.memory_space<vmem>>) attributes {dimension_semantics = [#tpu.dimension_semantics<parallel>], iteration_bounds = array<i64: 1>, scalar_prefetch = 0 : i64, scratch_operands = 0 : i64, tpu.core_type = #tpu.core_type<tc>, window_params = [{transform_indices = @transform_0, window_bounds = array<i64: 8, 48>}, {pipeline_mode = #tpu.pipeline_mode<synchronous>, transform_indices = @transform_1, window_bounds = array<i64: 48, 64>}, {pipeline_mode = #tpu.pipeline_mode<synchronous>, transform_indices = @transform_2, window_bounds = array<i64: 1, 64>}, {pipeline_mode = #tpu.pipeline_mode<synchronous>, transform_indices = @transform_3, window_bounds = array<i64: 64, 64>}, {pipeline_mode = #tpu.pipeline_mode<synchronous>, transform_indices = @transform_4, window_bounds = array<i64: 1, 64>}, {pipeline_mode = #tpu.pipeline_mode<synchronous>, transform_indices = @transform_5, window_bounds = array<i64: 64, 128>}, {pipeline_mode = #tpu.pipeline_mode<synchronous>, transform_indices = @transform_6, window_bounds = array<i64: 1, 128>}, {transform_indices = @transform_7, window_bounds = array<i64: 8, 8>}]} {
    %c0 = arith.constant 0 : index
    %c0_0 = arith.constant 0 : index
    %0 = vector.load %arg1[%c0, %c0_0] : memref<8x48xf32, #tpu.memory_space<vmem>>, vector<8x48xf32>
    %c0_1 = arith.constant 0 : index
    %c0_2 = arith.constant 0 : index
    %1 = vector.load %arg2[%c0_1, %c0_2] : memref<48x64xf32, #tpu.memory_space<vmem>>, vector<48x64xf32>
    %cst = arith.constant dense<0.000000e+00> : vector<8x64xf32>
    %2 = tpu.matmul %0, %1, %cst {dimension_numbers = #tpu.dot_dimension_numbers<[1], [0], [0], [1], [0, 0, 1, 1], [], []>} : vector<8x48xf32>, vector<48x64xf32>, vector<8x64xf32> -> vector<8x64xf32>
    %c0_3 = arith.constant 0 : index
    %c0_4 = arith.constant 0 : index
    %3 = vector.load %arg3[%c0_3, %c0_4] : memref<1x64xf32, #tpu.memory_space<vmem>>, vector<1x64xf32>
    %4 = vector.broadcast %3 : vector<1x64xf32> to vector<8x64xf32>
    %5 = arith.addf %2, %4 : vector<8x64xf32>
    %cst_5 = arith.constant 5.000000e-01 : f32
    %6 = vector.broadcast %cst_5 : f32 to vector<8x64xf32>
    %7 = arith.mulf %6, %5 : vector<8x64xf32>
    %cst_6 = arith.constant 5.000000e-01 : f32
    %8 = vector.broadcast %cst_6 : f32 to vector<8x64xf32>
    %9 = arith.mulf %8, %5 : vector<8x64xf32>
    %10 = math.tanh %9 : vector<8x64xf32>
    %cst_7 = arith.constant 1.000000e+00 : f32
    %11 = vector.broadcast %cst_7 : f32 to vector<8x64xf32>
    %12 = arith.addf %11, %10 : vector<8x64xf32>
    %13 = arith.mulf %7, %12 : vector<8x64xf32>
    %c0_8 = arith.constant 0 : index
    %c0_9 = arith.constant 0 : index
    %14 = vector.load %arg4[%c0_8, %c0_9] : memref<64x64xf32, #tpu.memory_space<vmem>>, vector<64x64xf32>
    %cst_10 = arith.constant dense<0.000000e+00> : vector<8x64xf32>
    %15 = tpu.matmul %13, %14, %cst_10 {dimension_numbers = #tpu.dot_dimension_numbers<[1], [0], [0], [1], [0, 0, 1, 1], [], []>} : vector<8x64xf32>, vector<64x64xf32>, vector<8x64xf32> -> vector<8x64xf32>
    %c0_11 = arith.constant 0 : index
    %c0_12 = arith.constant 0 : index
    %16 = vector.load %arg5[%c0_11, %c0_12] : memref<1x64xf32, #tpu.memory_space<vmem>>, vector<1x64xf32>
    %17 = vector.broadcast %16 : vector<1x64xf32> to vector<8x64xf32>
    %18 = arith.addf %15, %17 : vector<8x64xf32>
    %cst_13 = arith.constant 5.000000e-01 : f32
    %19 = vector.broadcast %cst_13 : f32 to vector<8x64xf32>
    %20 = arith.mulf %19, %18 : vector<8x64xf32>
    %cst_14 = arith.constant 5.000000e-01 : f32
    %21 = vector.broadcast %cst_14 : f32 to vector<8x64xf32>
    %22 = arith.mulf %21, %18 : vector<8x64xf32>
    %23 = math.tanh %22 : vector<8x64xf32>
    %cst_15 = arith.constant 1.000000e+00 : f32
    %24 = vector.broadcast %cst_15 : f32 to vector<8x64xf32>
    %25 = arith.addf %24, %23 : vector<8x64xf32>
    %26 = arith.mulf %20, %25 : vector<8x64xf32>
    %c0_16 = arith.constant 0 : index
    %c0_17 = arith.constant 0 : index
    %27 = vector.load %arg6[%c0_16, %c0_17] : memref<64x128xf32, #tpu.memory_space<vmem>>, vector<64x128xf32>
    %cst_18 = arith.constant dense<0.000000e+00> : vector<8x128xf32>
    %28 = tpu.matmul %26, %27, %cst_18 {dimension_numbers = #tpu.dot_dimension_numbers<[1], [0], [0], [1], [0, 0, 1, 1], [], []>} : vector<8x64xf32>, vector<64x128xf32>, vector<8x128xf32> -> vector<8x128xf32>
    %c0_19 = arith.constant 0 : index
    %c0_20 = arith.constant 0 : index
    %29 = vector.load %arg7[%c0_19, %c0_20] : memref<1x128xf32, #tpu.memory_space<vmem>>, vector<1x128xf32>
    %30 = vector.broadcast %29 : vector<1x128xf32> to vector<8x128xf32>
    %31 = arith.addf %28, %30 : vector<8x128xf32>
    %32 = vector.extract_strided_slice %31 {offsets = [0, 0], sizes = [8, 8], strides = [1, 1]} : vector<8x128xf32> to vector<8x8xf32>
    %cst_21 = arith.constant 5.000000e-01 : f32
    %33 = vector.broadcast %cst_21 : f32 to vector<8x8xf32>
    %34 = arith.mulf %33, %32 : vector<8x8xf32>
    %cst_22 = arith.constant 5.000000e-01 : f32
    %35 = vector.broadcast %cst_22 : f32 to vector<8x8xf32>
    %36 = arith.mulf %35, %32 : vector<8x8xf32>
    %37 = math.tanh %36 : vector<8x8xf32>
    %cst_23 = arith.constant 1.000000e+00 : f32
    %38 = vector.broadcast %cst_23 : f32 to vector<8x8xf32>
    %39 = arith.addf %38, %37 : vector<8x8xf32>
    %40 = arith.mulf %34, %39 : vector<8x8xf32>
    %c0_24 = arith.constant 0 : index
    %c0_25 = arith.constant 0 : index
    %41 = vector.load %arg8[%c0_24, %c0_25] : memref<8x8xf32, #tpu.memory_space<vmem>>, vector<8x8xf32>
    tpu.vector_store %arg8[%c0_24, %c0_25], %40 {strides = array<i32>} : memref<8x8xf32, #tpu.memory_space<vmem>>, vector<8x8xf32>,
    return
  }
  func.func @transform_0(%arg0: i32) -> (i32, i32) {
    %c0_i32 = arith.constant 0 : i32
    %c0_i32_0 = arith.constant 0 : i32
    return %arg0, %c0_i32 : i32, i32
  }
  func.func @transform_1(%arg0: i32) -> (i32, i32) {
    %c0_i32 = arith.constant 0 : i32
    %c0_i32_0 = arith.constant 0 : i32
    %c0_i32_1 = arith.constant 0 : i32
    return %c0_i32, %c0_i32_0 : i32, i32
  }
  func.func @transform_2(%arg0: i32) -> (i32, i32) {
    %c0_i32 = arith.constant 0 : i32
    %c0_i32_0 = arith.constant 0 : i32
    %c0_i32_1 = arith.constant 0 : i32
    return %c0_i32, %c0_i32_0 : i32, i32
  }
  func.func @transform_3(%arg0: i32) -> (i32, i32) {
    %c0_i32 = arith.constant 0 : i32
    %c0_i32_0 = arith.constant 0 : i32
    %c0_i32_1 = arith.constant 0 : i32
    return %c0_i32, %c0_i32_0 : i32, i32
  }
  func.func @transform_4(%arg0: i32) -> (i32, i32) {
    %c0_i32 = arith.constant 0 : i32
    %c0_i32_0 = arith.constant 0 : i32
    %c0_i32_1 = arith.constant 0 : i32
    return %c0_i32, %c0_i32_0 : i32, i32
  }
  func.func @transform_5(%arg0: i32) -> (i32, i32) {
    %c0_i32 = arith.constant 0 : i32
    %c0_i32_0 = arith.constant 0 : i32
    %c0_i32_1 = arith.constant 0 : i32
    return %c0_i32, %c0_i32_0 : i32, i32
  }
  func.func @transform_6(%arg0: i32) -> (i32, i32) {
    %c0_i32 = arith.constant 0 : i32
    %c0_i32_0 = arith.constant 0 : i32
    %c0_i32_1 = arith.constant 0 : i32
    return %c0_i32, %c0_i32_0 : i32, i32
  }
  func.func @transform_7(%arg0: i32) -> (i32, i32) {
    %c0_i32 = arith.constant 0 : i32
    %c0_i32_0 = arith.constant 0 : i32
    return %arg0, %c0_i32 : i32, i32
  }
}

</mosaic_0001>

<bundles_post_ra>
// kernel: tpu_custom_call.1
= control target key start
LH: loop header
LB: loop body
LE: loop exit
PB: predicated region body
PF: predicated region fallthrough
CT: control target
= control target key end

     0   :  { %12 = vsyncpa [#allocation3], 0  ;;  %s447_s0 = inlined_call_operand.hbm [shape: f32[8,48], index: 0, kind: input, shape index: {}]   ;;  %s448_s1 = inlined_call_operand.hbm [shape: f32[48,64], index: 1, kind: input, shape index: {}]   ;;  %s449_s2 = inlined_call_operand.vmem [shape: f32[1,64], index: 2, kind: input, shape index: {}]   ;;  %s450_s3 = inlined_call_operand.hbm [shape: f32[64,64], index: 3, kind: input, shape index: {}]   ;;  %s451_s4 = inlined_call_operand.vmem [shape: f32[1,64], index: 4, kind: input, shape index: {}]   ;;  %s452_s5 = inlined_call_operand.hbm [shape: f32[64,128], index: 5, kind: input, shape index: {}]   ;;  %s453_s6 = inlined_call_operand.vmem [shape: f32[1,128], index: 6, kind: input, shape index: {}]   ;;  %s454_s7 = inlined_call_operand.hbm [shape: f32[8,8], index: 7, kind: output, shape index: {}]  }
   0x1   :  { %13 = vsyncpa [#allocation6], 0 }
   0x2   :  { %14 = vsyncpa [#allocation9], 0  ;;  %s31_s26 = sshll.u32 %s448_s1, 4  ;;  %s32_s26 = int_to_ptr.hbm [resolvable:$true] %s31_s26 }
   0x3   :  { %15 = vsyncpa [#allocation4], 0  ;;  %s374_s27 = smov [#allocation5]   ;;  %s21_s8 = sshll.u32 %s447_s0, 4  ;;  %s22_s8 = int_to_ptr.hbm [resolvable:$true] %s21_s8 }
   0x4   :  { %s33_s28 = sshll.u32 %s374_s27, 4  ;;  %s375_s9 = smov 128   ;;  %s34_s28 = int_to_ptr.vmem [resolvable:$true] %s33_s28 }
   0x5   :  { %s376_s10 = smov 8   ;;  %s377_s11 = smov [#allocation2]  }
   0x6   :  { %39 = dma.hbm_to_vmem [thread:$0]  %s32_s26, 768, %s34_s28, [#allocation6], %s375_s9, %s375_s9, %s376_s10  }
   0x7   :  { %s23_s12 = sshll.u32 %s377_s11, 4  ;;  %s46_s15 = sshll.u32 %s450_s3, 4  ;;  %s24_s12 = int_to_ptr.vmem [resolvable:$true] %s23_s12  ;;  %s47_s15 = int_to_ptr.hbm [resolvable:$true] %s46_s15 }
   0x8   :  { %26 = dma.hbm_to_vmem [thread:$0]  %s22_s8, 128, %s24_s12, [#allocation3]  }
   0x9   :  { %s61_s17 = sshll.u32 %s452_s5, 4  ;;  %s378_s18 = smov [#allocation7]   ;;  %s62_s17 = int_to_ptr.hbm [resolvable:$true] %s61_s17 }
   0xa   :  { %s48_s19 = sshll.u32 %s378_s18, 4  ;;  %s379_s0 = smov [#allocation8]   ;;  %s49_s19 = int_to_ptr.vmem [resolvable:$true] %s48_s19 }
   0xb   :  { %54 = dma.hbm_to_vmem [thread:$0]  %s47_s15, 1024, %s49_s19, [#allocation6], %s375_s9, %s375_s9, %s376_s10  }
   0xc   :  { %s63_s20 = sshll.u32 %s379_s0, 4  ;;  %s64_s20 = int_to_ptr.vmem [resolvable:$true] %s63_s20 }
   0xd   :  { %69 = dma.hbm_to_vmem [thread:$0]  %s62_s17, 1024, %s64_s20, [#allocation9], %s375_s9, %s375_s9, %s376_s10  }
   0xe   :  { %366 = dma.done.wait [#allocation3], 128  }
   0xf   :  { %367 = vsyncadd [#allocation3], 4294967168 }
  0x10   :  { %368 = dma.done.wait [#allocation6], 1792  }
  0x11   :  { %369 = vsyncadd [#allocation6], 4294965504 }
  0x12   :  { %370 = dma.done.wait [#allocation9], 1024  }
  0x13   :  { %371 = vsyncadd [#allocation9], 4294966272  ;;  %v94_v0 = vld [vmem:[#allocation5 + $0x28] sm:$0xff]  ;;  %v93_v1 = vld [vmem:[#allocation5 + $0x20] sm:$0xff]  ;;  %vm99_vm0 = vcmask 392192   ;;  %vm139_vm1 = vcmask 523264  }
  0x14   :  { %113 = vmatpush.msra.mxu0 %v94_v0  ;;  %v92_v2 = vld [vmem:[#allocation5 + $0x18] sm:$0xff]  ;;  %v91_v3 = vld [vmem:[#allocation5 + $0x10] sm:$0xff]  ;;  %v90_v4 = vld [vmem:[#allocation5 + $0x8] sm:$0xff]  ;;  %s380_s24 = smov [#allocation10]   ;;  %s215_s27 = sshll.u32 %s454_s7, 4  ;;  %vm206_vm2 = vcmask 64512   ;;  %s216_s27 = int_to_ptr.hbm [resolvable:$true] %s215_s27 }
  0x15   :  { %v89_v5 = vld [vmem:[#allocation5] sm:$0xff]  ;;  %v88_v6 = vld [vmem:[#allocation2] sm:$0xff]  ;;  %v134_v7 = vld [vmem:[#allocation7 + $0x38] sm:$0xff] }
  0x16   :  { %114 = vmatpush.msra.mxu0 %v93_v1  ;;  %151 = vmatpush.msra.mxu1 %v134_v7  ;;  %v133_v8 = vld [vmem:[#allocation7 + $0x30] sm:$0xff]  ;;  %v132_v9 = vld [vmem:[#allocation7 + $0x28] sm:$0xff]  ;;  %v131_v10 = vld [vmem:[#allocation7 + $0x20] sm:$0xff] }
  0x17   :  { %v130_v11 = vld [vmem:[#allocation7 + $0x18] sm:$0xff]  ;;  %v129_v12 = vld [vmem:[#allocation7 + $0x10] sm:$0xff]  ;;  %v128_v13 = vld [vmem:[#allocation7 + $0x8] sm:$0xff] }
  0x18   :  { %115 = vmatpush.msra.mxu0 %v92_v2  ;;  %152 = vmatpush.msra.mxu1 %v133_v8  ;;  %v127_v14 = vld [vmem:[#allocation7] sm:$0xff]  ;;  %v237_v15 = vld [vmem:[%s449_s2] ss:$0 sm:$0xff]  ;;  %v174_v22 = vld [vmem:[#allocation8 + $0x38] sm:$0xff] }
  0x19   :  { %190 = vmatpush.msra.mxu2 %v174_v22  ;;  %v173_v23 = vld [vmem:[#allocation8 + $0x30] sm:$0xff]  ;;  %v172_v24 = vld [vmem:[#allocation8 + $0x28] sm:$0xff]  ;;  %v171_v25 = vld [vmem:[#allocation8 + $0x20] sm:$0xff] }
  0x1a   :  { %116 = vmatpush.msra.mxu0 %v91_v3  ;;  %153 = vmatpush.msra.mxu1 %v132_v9  ;;  %v170_v26 = vld [vmem:[#allocation8 + $0x18] sm:$0xff]  ;;  %v169_v27 = vld [vmem:[#allocation8 + $0x10] sm:$0xff]  ;;  %v168_v28 = vld [vmem:[#allocation8 + $0x8] sm:$0xff] }
  0x1b   :  { %191 = vmatpush.msra.mxu2 %v173_v23  ;;  %v167_v29 = vld [vmem:[#allocation8] sm:$0xff]  ;;  %v238_v30 = vld [vmem:[%s451_s4] ss:$0 sm:$0xff]  ;;  %s213_s4 = sshll.u32 %s380_s24, 4  ;;  %s214_s4 = int_to_ptr.vmem [resolvable:$true] %s213_s4 }
  0x1c   :  { %117 = vmatpush.msra.mxu0 %v90_v4  ;;  %154 = vmatpush.msra.mxu1 %v131_v10  ;;  %v239_v37 = vld [vmem:[%s453_s6] ss:$0 sm:$0xff] }
  0x1d   :  { %192 = vmatpush.msra.mxu2 %v172_v24 }
  0x1e   :  { %118 = vmatpush.msra.mxu0 %v89_v5  ;;  %155 = vmatpush.msra.mxu1 %v130_v11 }
  0x1f   :  { %227 = vmatmul.msk.f32.vlgmr.msra.gmra.mxu0 %vm99_vm0, %v88_v6  ;;  %193 = vmatpush.msra.mxu2 %v171_v25 }
  0x20   :  { %156 = vmatpush.msra.mxu1 %v129_v12 }
  0x21   :  { %194 = vmatpush.msra.mxu2 %v170_v26 }
  0x22   :  { %157 = vmatpush.msra.mxu1 %v128_v13 }
  0x23   :  { %195 = vmatpush.msra.mxu2 %v169_v27 }
  0x24   :  { %158 = vmatpush.msra.mxu1 %v127_v14 }
  0x25   :  { %196 = vmatpush.msra.mxu2 %v168_v28 }
  0x27   :  { %197 = vmatpush.msra.mxu2 %v167_v29 }
  0x9c   :  { %v120_v16 = vpop.f32.mrf.mxu0 }
  0x9d   :  { %v121_v17 = vadd.f32 %v237_v15, %v120_v16 }
  0x9f   :  { %v123_v18 = vmul.f32 0.5, %v121_v17 }
  0xa1   :  { %240 = vtanh.f32 %v123_v18 }
  0xa7   :  { %v241_v19 = vpop.eup %240 }
  0xa8   :  { %v125_v20 = vadd.f32 1.0, %v241_v19 }
  0xaa   :  { %v126_v21 = vmul.f32 %v125_v20, %v123_v18 }
  0xac   :  { %228 = vmatmul.msk.f32.vlgmr.msra.gmra.mxu1 %vm139_vm1, %v126_v21 }
 0x129   :  { %v160_v31 = vpop.f32.mrf.mxu1 }
 0x12a   :  { %v161_v32 = vadd.f32 %v238_v30, %v160_v31 }
 0x12c   :  { %v163_v33 = vmul.f32 0.5, %v161_v32 }
 0x12e   :  { %242 = vtanh.f32 %v163_v33 }
 0x134   :  { %v243_v34 = vpop.eup %242 }
 0x135   :  { %v165_v35 = vadd.f32 1.0, %v243_v34 }
 0x137   :  { %v166_v36 = vmul.f32 %v165_v35, %v163_v33 }
 0x139   :  { %229 = vmatmul.msk.f32.vlgmr.msra.gmra.mxu2 %vm139_vm1, %v166_v36 }
 0x1bc   :  { %v199_v38 = vpop.f32.mrf.mxu2 }
 0x1bd   :  { %v200_v39 = vadd.f32 %v239_v37, %v199_v38 }
 0x1bf   :  { %v202_v40 = vmul.f32 0.5, %v200_v39 }
 0x1c1   :  { %244 = vtanh.f32 %v202_v40 }
 0x1c7   :  { %v245_v41 = vpop.eup %244 }
 0x1c8   :  { %v204_v42 = vadd.f32 1.0, %v245_v41 }
 0x1ca   :  { %v205_v43 = vmul.f32 %v204_v42, %v202_v40 }
 0x1cc   :  { %207 = vst.msk [vmem:[#allocation10] sm:$0xff] %vm206_vm2, %v205_v43 }
 0x1cd   :  { %218 = dma.vmem_to_hbm [thread:$0]  %s214_s4, 128, %s216_s27, [#allocation4]  }
 0x1ce   :  { %372 = dma.done.wait [#allocation4], 128  }
 0x1cf   :  { %373 = vsyncadd [#allocation4], 4294967168 }
 0x1d0   :  { %223 = vsyncpa [#allocation3], 1 }
 0x1d1   :  { %224 = vsyncpa [#allocation6], 1 }
 0x1d2   :  { %225 = vsyncpa [#allocation9], 1 }
 0x1d3   :  { %226 = vsyncpa [#allocation4], 1 }

</bundles_post_ra>
